<compile_context>
chip_gen: v7x
topology: tpu7x:2x2x1
jax: 0.10.0
libtpu: 0.0.40
codegen_flags: <defaults>
</compile_context>

<pallas_src>
import functools

import jax
import jax.numpy as jnp
from jax import lax
from jax.experimental import pallas as pl
from jax.experimental.pallas import tpu as pltpu


def _conv_pre_wav_kernel(x_ref, halo_ref, w1_ref, w2_ref, b_ref, sel_ref,
                         out_ref, *, L, Lt, HW, pool):
    # x_ref   : (1, Cin, Lt)        tile body
    # halo_ref: (1, 1, Cin, 2*HW)   [left halo | right halo] for this tile
    # w1_ref  : (Cout, 3*Cin)       conv1 weights, taps fused, BN1 scale folded
    # w2_ref  : (Cout, 3*Cout)      conv2 weights, taps fused, BN2 scale folded
    # b_ref   : (Cout, 2)           folded BN biases (col 0: BN1, col 1: BN2)
    # sel_ref : (128*pool, 128)     0/1 pooling selection matrix (constant)
    # out_ref : (1, Cout, Lt//pool)
    j = pl.program_id(1)
    Cout = out_ref.shape[1]
    We = Lt + 2 * HW            # extended (haloed) tile width
    Lo_t = Lt // pool           # pooled output width of this tile

    # Assemble the haloed input tile: [left halo | body | right halo].
    # All pieces are 128-lane aligned, so the concat is just vreg placement.
    x_tile = x_ref[0]                                        # (Cin, Lt)
    halo = halo_ref[0, 0]                                    # (Cin, 2*HW)
    x_ext = jnp.concatenate(
        [halo[:, :HW], x_tile, halo[:, HW:]], axis=-1)       # (Cin, We)

    # ---- conv1 (k=3, pad=1): one MXU matmul with K = 3*Cin -----------------
    # Tap t multiplies x[l + t - 1]; the shifted views are in-register lane
    # rotations.  The cyclically wrapped edge columns never reach the body.
    xs = jnp.concatenate(
        [jnp.roll(x_ext, 1, axis=1),      # x[l-1]
         x_ext,                           # x[l]
         jnp.roll(x_ext, -1, axis=1)],    # x[l+1]
        axis=0)                           # (3*Cin, We)
    y1 = jnp.dot(w1_ref[...], xs, preferred_element_type=jnp.float32)
    h1 = jnp.maximum(y1 + b_ref[:, 0:1], 0.0)                # BN1 + ReLU

    # conv2 zero-pads its input: zero h1 outside the valid global range [0, L)
    gpos = jax.lax.broadcasted_iota(jnp.int32, (1, We), 1) + (j * Lt - HW)
    h1 = jnp.where((gpos >= 0) & (gpos < L), h1, 0.0)

    # ---- conv2 (k=3, dilation=2, pad=2): one matmul with K = 3*Cout --------
    hs = jnp.concatenate(
        [jnp.roll(h1, 2, axis=1),         # h1[l-2]
         h1,                              # h1[l]
         jnp.roll(h1, -2, axis=1)],       # h1[l+2]
        axis=0)                           # (3*Cout, We)
    y2 = jnp.dot(w2_ref[...], hs, preferred_element_type=jnp.float32)
    h2 = jnp.maximum(y2 + b_ref[:, 1:2], 0.0)                # BN2 + ReLU

    h2c = h2[:, HW:HW + Lt]               # tile body (128-aligned slice)

    # ---- MaxPool1d(pool), lane-dense ---------------------------------------
    # Window max via lane rolls (used windows never wrap since Lt % pool == 0)
    m = h2c
    for i in range(1, pool):
        m = jnp.maximum(m, jnp.roll(h2c, -i, axis=1))
    # ... then pick every pool-th lane with a small 0/1 selection matmul,
    # which stays lane-dense (no pool-size-last relayout, no strided loads).
    G = 128 * pool
    pooled = jnp.dot(m.reshape(Cout * (Lt // G), G), sel_ref[...],
                     preferred_element_type=jnp.float32)
    out_ref[0] = pooled.reshape(Cout, Lo_t).astype(out_ref.dtype)


def conv_pre_wav_block(x, w1, w2, bn1, bn2, pool_size, *,
                       eps=1e-5, target_lanes=2048):
    """x: (B, Cin, L) f32; w1: (Cout, Cin, 3); w2: (Cout, Cout, 3).

    bn1/bn2: dicts with 'gamma','beta','mean','var' of shape (Cout,) (eval).
    Returns (B, Cout, L // pool_size).
    """
    B, Cin, L = x.shape
    Cout = w1.shape[0]
    Lo = L // pool_size
    HW = 128                               # halo width (>= 3, lane aligned)

    # L-tile: a multiple of 128*pool_size so the pooled output block is a
    # multiple of 128 lanes.  ~2048 lanes keeps per-step VMEM well inside the
    # default scoped limit on v5e/v6e/v7x; halve target_lanes if VMEM-pressed.
    unit = 128 * pool_size
    Lt = min(max(unit, (target_lanes // unit) * unit), unit * pl.cdiv(L, unit))
    nLt = pl.cdiv(L, Lt)
    L_pad = nLt * Lt

    # Fold eval-mode BN into the conv weights (scale) + a per-channel bias.
    def fold(bn):
        s = bn["gamma"] / jnp.sqrt(bn["var"] + eps)
        return (s.astype(jnp.float32),
                (bn["beta"] - bn["mean"] * s).astype(jnp.float32))

    s1, b1 = fold(bn1)
    s2, b2 = fold(bn2)
    # (Cout, Cin, 3) -> (Cout, 3*Cin), tap-major K so the K blocks line up with
    # the [x(l-1); x(l); x(l+1)] stacking inside the kernel.
    w1f = (jnp.transpose(w1, (0, 2, 1)).reshape(Cout, 3 * Cin)
           * s1[:, None]).astype(jnp.float32)
    w2f = (jnp.transpose(w2, (0, 2, 1)).reshape(Cout, 3 * Cout)
           * s2[:, None]).astype(jnp.float32)
    bias = jnp.stack([b1, b2], axis=1)                       # (Cout, 2)

    # Constant 0/1 pooling selection matrix: sel[k, c] = 1 iff k == c*pool.
    G = 128 * pool_size
    row = jnp.arange(G, dtype=jnp.int32)[:, None]
    col = jnp.arange(128, dtype=jnp.int32)[None, :]
    sel = (row == col * pool_size).astype(jnp.float32)       # (G, 128)

    xc = jnp.pad(x.astype(jnp.float32), ((0, 0), (0, 0), (0, L_pad - L)))
    # Per-tile halos (128 columns each side), gathered from the zero-padded
    # signal: a tiny (B, nLt, Cin, 2*HW) side input, so the main x blocks stay
    # non-overlapping and auto-pipelined.
    xh = jnp.pad(xc, ((0, 0), (0, 0), (HW, HW)))
    offs = jnp.concatenate([jnp.arange(HW), HW + Lt + jnp.arange(HW)])
    idx = (jnp.arange(nLt) * Lt)[:, None] + offs[None, :]    # (nLt, 2*HW)
    halos = jnp.transpose(xh[:, :, idx], (0, 2, 1, 3))       # (B, nLt, Cin, 2*HW)

    kernel = functools.partial(_conv_pre_wav_kernel,
                               L=L, Lt=Lt, HW=HW, pool=pool_size)
    out_pad = pl.pallas_call(
        kernel,
        out_shape=jax.ShapeDtypeStruct((B, Cout, L_pad // pool_size),
                                       jnp.float32),
        grid_spec=pltpu.PrefetchScalarGridSpec(
            num_scalar_prefetch=0,
            grid=(B, nLt),
            in_specs=[
                pl.BlockSpec((1, Cin, Lt), lambda b, j: (b, 0, j)),
                pl.BlockSpec((1, 1, Cin, 2 * HW), lambda b, j: (b, j, 0, 0)),
                pl.BlockSpec((Cout, 3 * Cin), lambda b, j: (0, 0)),
                pl.BlockSpec((Cout, 3 * Cout), lambda b, j: (0, 0)),
                pl.BlockSpec((Cout, 2), lambda b, j: (0, 0)),
                pl.BlockSpec((G, 128), lambda b, j: (0, 0)),
            ],
            out_specs=pl.BlockSpec((1, Cout, Lt // pool_size),
                                   lambda b, j: (b, 0, j)),
        ),
        compiler_params=pltpu.CompilerParams(
            # Tiles are independent: both axes parallel (keeps both v7x
            # TensorCores busy even when B == 1).
            dimension_semantics=("parallel", "parallel"),
            vmem_limit_bytes=48 * 1024 * 1024),
    )(xc, halos, w1f, w2f, bias, sel)
    return out_pad[:, :, :Lo]


def _reference(x, w1, w2, bn1, bn2, pool_size):
    """Pure-JAX reference mirroring the PyTorch forward (eval-mode BN)."""
    eps = 1e-5
    dn = ("NCH", "OIH", "NCH")

    def bn_relu(y, bn):
        s = bn["gamma"] / jnp.sqrt(bn["var"] + eps)
        b = bn["beta"] - bn["mean"] * s
        return jax.nn.relu(y * s[None, :, None] + b[None, :, None])

    y1 = lax.conv_general_dilated(x, w1, (1,), ((1, 1),), dimension_numbers=dn)
    h1 = bn_relu(y1, bn1)
    y2 = lax.conv_general_dilated(h1, w2, (1,), ((2, 2),),
                                  rhs_dilation=(2,), dimension_numbers=dn)
    h2 = bn_relu(y2, bn2)
    B, C, L = h2.shape
    Lo = L // pool_size
    return jnp.max(h2[:, :, :Lo * pool_size].reshape(B, C, Lo, pool_size),
                   axis=-1)


def _xavier_uniform(key, shape):
    # shape = (out_ch, in_ch, k); fan_in = in_ch*k, fan_out = out_ch*k
    fan_in = shape[1] * shape[2]
    fan_out = shape[0] * shape[2]
    bound = jnp.sqrt(6.0 / (fan_in + fan_out))
    return jax.random.uniform(key, shape, jnp.float32, -bound, bound)


def _random_bn(key, c):
    kg, kb, km, kv = jax.random.split(key, 4)
    return {"gamma": jax.random.uniform(kg, (c,), jnp.float32, 0.5, 1.5),
            "beta": 0.1 * jax.random.normal(kb, (c,), jnp.float32),
            "mean": 0.1 * jax.random.normal(km, (c,), jnp.float32),
            "var": jax.random.uniform(kv, (c,), jnp.float32, 0.5, 1.5)}


def _run_case(key, B, Cin, Cout, L, pool_size, target_lanes):
    kx, kw1, kw2, kb1, kb2 = jax.random.split(key, 5)
    x = jax.random.normal(kx, (B, Cin, L), jnp.float32)
    w1 = _xavier_uniform(kw1, (Cout, Cin, 3))
    w2 = _xavier_uniform(kw2, (Cout, Cout, 3))
    bn1 = _random_bn(kb1, Cout)
    bn2 = _random_bn(kb2, Cout)

    out = conv_pre_wav_block(x, w1, w2, bn1, bn2, pool_size,
                             target_lanes=target_lanes)
    out = jax.block_until_ready(out)
    ref = _reference(x, w1, w2, bn1, bn2, pool_size)
    assert out.shape == (B, Cout, L // pool_size), out.shape
    assert jnp.allclose(out, ref, atol=1e-4, rtol=1e-4), \
        float(jnp.max(jnp.abs(out - ref)))


if __name__ == "__main__":
    k0, k1 = jax.random.split(jax.random.PRNGKey(0))
    # Small shapes from the module spec (single L-tile path).
    _run_case(k0, B=2, Cin=4, Cout=8, L=16, pool_size=2, target_lanes=2048)
    # Multi-tile path: exercises cross-tile halos, the zero-padded tail and
    # pool_size=4 (small target_lanes forces nLt > 1 at a still-small L).
    _run_case(k1, B=2, Cin=4, Cout=8, L=640, pool_size=4, target_lanes=256)
    print("KERNEL_OK")
</pallas_src>

<mosaic_0001>
module attributes {stable_mosaic.version = 11 : i64} {
  func.func @_conv_pre_wav_kernel(%arg0: i32, %arg1: i32, %arg2: memref<1x4x256xf32, #tpu.memory_space<vmem>>, %arg3: memref<1x1x4x256xf32, #tpu.memory_space<vmem>>, %arg4: memref<8x12xf32, #tpu.memory_space<vmem>>, %arg5: memref<8x24xf32, #tpu.memory_space<vmem>>, %arg6: memref<8x2xf32, #tpu.memory_space<vmem>>, %arg7: memref<256x128xf32, #tpu.memory_space<vmem>>, %arg8: memref<1x8x128xf32, #tpu.memory_space<vmem>>) attributes {dimension_semantics = [#tpu.dimension_semantics<parallel>, #tpu.dimension_semantics<parallel>], iteration_bounds = array<i64: 2, 1>, scalar_prefetch = 0 : i64, scratch_operands = 0 : i64, tpu.core_type = #tpu.core_type<tc>, window_params = [{transform_indices = @transform_0, window_bounds = array<i64: 1, 4, 256>}, {transform_indices = @transform_1, window_bounds = array<i64: 1, 1, 4, 256>}, {pipeline_mode = #tpu.pipeline_mode<synchronous>, transform_indices = @transform_2, window_bounds = array<i64: 8, 12>}, {pipeline_mode = #tpu.pipeline_mode<synchronous>, transform_indices = @transform_3, window_bounds = array<i64: 8, 24>}, {pipeline_mode = #tpu.pipeline_mode<synchronous>, transform_indices = @transform_4, window_bounds = array<i64: 8, 2>}, {pipeline_mode = #tpu.pipeline_mode<synchronous>, transform_indices = @transform_5, window_bounds = array<i64: 256, 128>}, {transform_indices = @transform_6, window_bounds = array<i64: 1, 8, 128>}]} {
    %c0 = arith.constant 0 : index
    %c0_0 = arith.constant 0 : index
    %c0_1 = arith.constant 0 : index
    %0 = vector.load %arg2[%c0, %c0_0, %c0_1] : memref<1x4x256xf32, #tpu.memory_space<vmem>>, vector<1x4x256xf32>
    %1 = vector.shape_cast %0 : vector<1x4x256xf32> to vector<4x256xf32>
    %c0_2 = arith.constant 0 : index
    %c0_3 = arith.constant 0 : index
    %c0_4 = arith.constant 0 : index
    %c0_5 = arith.constant 0 : index
    %2 = vector.load %arg3[%c0_2, %c0_3, %c0_4, %c0_5] : memref<1x1x4x256xf32, #tpu.memory_space<vmem>>, vector<1x1x4x256xf32>
    %3 = vector.shape_cast %2 : vector<1x1x4x256xf32> to vector<4x256xf32>
    %4 = vector.extract_strided_slice %3 {offsets = [0, 0], sizes = [4, 128], strides = [1, 1]} : vector<4x256xf32> to vector<4x128xf32>
    %5 = vector.extract_strided_slice %3 {offsets = [0, 128], sizes = [4, 128], strides = [1, 1]} : vector<4x256xf32> to vector<4x128xf32>
    %6 = tpu.concatenate %4, %1, %5 in 1 : vector<4x128xf32>, vector<4x256xf32>, vector<4x128xf32> -> vector<4x512xf32>
    %7 = vector.extract_strided_slice %6 {offsets = [0, 511], sizes = [4, 1], strides = [1, 1]} : vector<4x512xf32> to vector<4x1xf32>
    %8 = vector.extract_strided_slice %6 {offsets = [0, 0], sizes = [4, 511], strides = [1, 1]} : vector<4x512xf32> to vector<4x511xf32>
    %9 = tpu.concatenate %7, %8 in 1 : vector<4x1xf32>, vector<4x511xf32> -> vector<4x512xf32>
    %10 = vector.extract_strided_slice %6 {offsets = [0, 1], sizes = [4, 511], strides = [1, 1]} : vector<4x512xf32> to vector<4x511xf32>
    %11 = vector.extract_strided_slice %6 {offsets = [0, 0], sizes = [4, 1], strides = [1, 1]} : vector<4x512xf32> to vector<4x1xf32>
    %12 = tpu.concatenate %10, %11 in 1 : vector<4x511xf32>, vector<4x1xf32> -> vector<4x512xf32>
    %13 = tpu.concatenate %9, %6, %12 in 0 : vector<4x512xf32>, vector<4x512xf32>, vector<4x512xf32> -> vector<12x512xf32>
    %c0_6 = arith.constant 0 : index
    %c0_7 = arith.constant 0 : index
    %14 = vector.load %arg4[%c0_6, %c0_7] : memref<8x12xf32, #tpu.memory_space<vmem>>, vector<8x12xf32>
    %cst = arith.constant dense<0.000000e+00> : vector<8x512xf32>
    %15 = tpu.matmul %14, %13, %cst {dimension_numbers = #tpu.dot_dimension_numbers<[1], [0], [0], [1], [0, 0, 1, 1], [], []>} : vector<8x12xf32>, vector<12x512xf32>, vector<8x512xf32> -> vector<8x512xf32>
    %c0_8 = arith.constant 0 : index
    %c0_9 = arith.constant 0 : index
    %16 = vector.load %arg6[%c0_8, %c0_9] : memref<8x2xf32, #tpu.memory_space<vmem>>, vector<8x1xf32>
    %17 = vector.broadcast %16 : vector<8x1xf32> to vector<8x512xf32>
    %18 = arith.addf %15, %17 : vector<8x512xf32>
    %cst_10 = arith.constant 0.000000e+00 : f32
    %19 = vector.broadcast %cst_10 : f32 to vector<8x512xf32>
    %20 = arith.maximumf %18, %19 : vector<8x512xf32>
    %21 = tpu.iota {dimensions = array<i32: 1>} : vector<1x512xi32>
    %c256_i32 = arith.constant 256 : i32
    %22 = arith.muli %arg1, %c256_i32 : i32
    %c128_i32 = arith.constant 128 : i32
    %23 = arith.subi %22, %c128_i32 : i32
    %24 = vector.broadcast %23 : i32 to vector<1x512xi32>
    %25 = arith.addi %21, %24 : vector<1x512xi32>
    %c0_i32 = arith.constant 0 : i32
    %26 = vector.broadcast %c0_i32 : i32 to vector<1x512xi32>
    %27 = arith.cmpi sge, %25, %26 : vector<1x512xi32>
    %c16_i32 = arith.constant 16 : i32
    %28 = vector.broadcast %c16_i32 : i32 to vector<1x512xi32>
    %29 = arith.cmpi slt, %25, %28 : vector<1x512xi32>
    %30 = arith.andi %27, %29 : vector<1x512xi1>
    %cst_11 = arith.constant 0.000000e+00 : f32
    %31 = vector.shape_cast %30 : vector<1x512xi1> to vector<1x512xi1>
    %32 = vector.broadcast %31 : vector<1x512xi1> to vector<8x512xi1>
    %33 = vector.broadcast %cst_11 : f32 to vector<8x512xf32>
    %34 = arith.select %32, %20, %33 : vector<8x512xi1>, vector<8x512xf32>
    %35 = vector.extract_strided_slice %34 {offsets = [0, 510], sizes = [8, 2], strides = [1, 1]} : vector<8x512xf32> to vector<8x2xf32>
    %36 = vector.extract_strided_slice %34 {offsets = [0, 0], sizes = [8, 510], strides = [1, 1]} : vector<8x512xf32> to vector<8x510xf32>
    %37 = tpu.concatenate %35, %36 in 1 : vector<8x2xf32>, vector<8x510xf32> -> vector<8x512xf32>
    %38 = vector.extract_strided_slice %34 {offsets = [0, 2], sizes = [8, 510], strides = [1, 1]} : vector<8x512xf32> to vector<8x510xf32>
    %39 = vector.extract_strided_slice %34 {offsets = [0, 0], sizes = [8, 2], strides = [1, 1]} : vector<8x512xf32> to vector<8x2xf32>
    %40 = tpu.concatenate %38, %39 in 1 : vector<8x510xf32>, vector<8x2xf32> -> vector<8x512xf32>
    %41 = tpu.concatenate %37, %34, %40 in 0 : vector<8x512xf32>, vector<8x512xf32>, vector<8x512xf32> -> vector<24x512xf32>
    %c0_12 = arith.constant 0 : index
    %c0_13 = arith.constant 0 : index
    %42 = vector.load %arg5[%c0_12, %c0_13] : memref<8x24xf32, #tpu.memory_space<vmem>>, vector<8x24xf32>
    %cst_14 = arith.constant dense<0.000000e+00> : vector<8x512xf32>
    %43 = tpu.matmul %42, %41, %cst_14 {dimension_numbers = #tpu.dot_dimension_numbers<[1], [0], [0], [1], [0, 0, 1, 1], [], []>} : vector<8x24xf32>, vector<24x512xf32>, vector<8x512xf32> -> vector<8x512xf32>
    %c0_15 = arith.constant 0 : index
    %c1 = arith.constant 1 : index
    %44 = vector.load %arg6[%c0_15, %c1] : memref<8x2xf32, #tpu.memory_space<vmem>>, vector<8x1xf32>
    %45 = vector.broadcast %44 : vector<8x1xf32> to vector<8x512xf32>
    %46 = arith.addf %43, %45 : vector<8x512xf32>
    %cst_16 = arith.constant 0.000000e+00 : f32
    %47 = vector.broadcast %cst_16 : f32 to vector<8x512xf32>
    %48 = arith.maximumf %46, %47 : vector<8x512xf32>
    %49 = vector.extract_strided_slice %48 {offsets = [0, 128], sizes = [8, 256], strides = [1, 1]} : vector<8x512xf32> to vector<8x256xf32>
    %50 = vector.extract_strided_slice %49 {offsets = [0, 1], sizes = [8, 255], strides = [1, 1]} : vector<8x256xf32> to vector<8x255xf32>
    %51 = vector.extract_strided_slice %49 {offsets = [0, 0], sizes = [8, 1], strides = [1, 1]} : vector<8x256xf32> to vector<8x1xf32>
    %52 = tpu.concatenate %50, %51 in 1 : vector<8x255xf32>, vector<8x1xf32> -> vector<8x256xf32>
    %53 = arith.maximumf %49, %52 : vector<8x256xf32>
    %c0_17 = arith.constant 0 : index
    %c0_18 = arith.constant 0 : index
    %54 = vector.load %arg7[%c0_17, %c0_18] : memref<256x128xf32, #tpu.memory_space<vmem>>, vector<256x128xf32>
    %cst_19 = arith.constant dense<0.000000e+00> : vector<8x128xf32>
    %55 = tpu.matmul %53, %54, %cst_19 {dimension_numbers = #tpu.dot_dimension_numbers<[1], [0], [0], [1], [0, 0, 1, 1], [], []>} : vector<8x256xf32>, vector<256x128xf32>, vector<8x128xf32> -> vector<8x128xf32>
    %c0_20 = arith.constant 0 : index
    %c0_21 = arith.constant 0 : index
    %c0_22 = arith.constant 0 : index
    %56 = vector.load %arg8[%c0_20, %c0_21, %c0_22] : memref<1x8x128xf32, #tpu.memory_space<vmem>>, vector<1x8x128xf32>
    %57 = vector.shape_cast %56 : vector<1x8x128xf32> to vector<8x128xf32>
    %58 = vector.shape_cast %55 : vector<8x128xf32> to vector<1x8x128xf32>
    tpu.vector_store %arg8[%c0_20, %c0_21, %c0_22], %58 {strides = array<i32>} : memref<1x8x128xf32, #tpu.memory_space<vmem>>, vector<1x8x128xf32>,
    return
  }
  func.func @transform_0(%arg0: i32, %arg1: i32) -> (i32, i32, i32) {
    %c0_i32 = arith.constant 0 : i32
    %c0_i32_0 = arith.constant 0 : i32
    return %arg0, %c0_i32, %arg1 : i32, i32, i32
  }
  func.func @transform_1(%arg0: i32, %arg1: i32) -> (i32, i32, i32, i32) {
    %c0_i32 = arith.constant 0 : i32
    %c0_i32_0 = arith.constant 0 : i32
    %c0_i32_1 = arith.constant 0 : i32
    return %arg0, %arg1, %c0_i32, %c0_i32_0 : i32, i32, i32, i32
  }
  func.func @transform_2(%arg0: i32, %arg1: i32) -> (i32, i32) {
    %c0_i32 = arith.constant 0 : i32
    %c0_i32_0 = arith.constant 0 : i32
    %c0_i32_1 = arith.constant 0 : i32
    return %c0_i32, %c0_i32_0 : i32, i32
  }
  func.func @transform_3(%arg0: i32, %arg1: i32) -> (i32, i32) {
    %c0_i32 = arith.constant 0 : i32
    %c0_i32_0 = arith.constant 0 : i32
    %c0_i32_1 = arith.constant 0 : i32
    return %c0_i32, %c0_i32_0 : i32, i32
  }
  func.func @transform_4(%arg0: i32, %arg1: i32) -> (i32, i32) {
    %c0_i32 = arith.constant 0 : i32
    %c0_i32_0 = arith.constant 0 : i32
    %c0_i32_1 = arith.constant 0 : i32
    return %c0_i32, %c0_i32_0 : i32, i32
  }
  func.func @transform_5(%arg0: i32, %arg1: i32) -> (i32, i32) {
    %c0_i32 = arith.constant 0 : i32
    %c0_i32_0 = arith.constant 0 : i32
    %c0_i32_1 = arith.constant 0 : i32
    return %c0_i32, %c0_i32_0 : i32, i32
  }
  func.func @transform_6(%arg0: i32, %arg1: i32) -> (i32, i32, i32) {
    %c0_i32 = arith.constant 0 : i32
    %c0_i32_0 = arith.constant 0 : i32
    return %arg0, %c0_i32, %arg1 : i32, i32, i32
  }
}

</mosaic_0001>

<bundles_post_ra>
// kernel: tpu_custom_call.1
= control target key start
LH: loop header
LB: loop body
LE: loop exit
PB: predicated region body
PF: predicated region fallthrough
CT: control target
= control target key end

     0   :  { %s1825_s0 = inlined_call_operand.hbm [shape: f32[2,4,256], index: 0, kind: input, shape index: {}]   ;;  %s1826_s1 = inlined_call_operand.hbm [shape: f32[2,1,4,256], index: 1, kind: input, shape index: {}]   ;;  %s1827_s2 = inlined_call_operand.vmem [shape: f32[8,12], index: 2, kind: input, shape index: {}]   ;;  %s1828_s3 = inlined_call_operand.vmem [shape: f32[8,24], index: 3, kind: input, shape index: {}]   ;;  %s1829_s4 = inlined_call_operand.vmem [shape: f32[8,2], index: 4, kind: input, shape index: {}]   ;;  %s1830_s5 = inlined_call_operand.hbm [shape: f32[256,128], index: 5, kind: input, shape index: {}]   ;;  %s1831_s6 = inlined_call_operand.hbm [shape: f32[2,8,128], index: 6, kind: output, shape index: {}]  }
   0x1   :  { %1839 = sst [smem:[#allocation17_spill]] %s1830_s5 }
   0x2   :  { %11 = vsyncpa [#allocation3], 0 }
   0x3   :  { %13 = vsyncpa [#allocation3 + $0x1], 0 }
   0x4   :  { %14 = vsyncpa [#allocation6], 0 }
   0x5   :  { %16 = vsyncpa [#allocation6 + $0x1], 0 }
   0x6   :  { %17 = vsyncpa [#allocation4], 0 }
   0x7   :  { %19 = vsyncpa [#allocation4 + $0x1], 0  ;;  %s1507_s21 = smov 0   ;;  %s1509_s22 = smov 0  }
   0x8   :  { %s1511_s23 = smov 0   ;;  %s1513_s24 = smov 0  }
   0x9   :  { %s1515_s25 = smov 0   ;;  %s1517_s26 = smov 0  }
   0xa LB: > { %1840 = sst [smem:[#allocation13_spill]] %s1444_s23  ;;  %s1538_s27 = sadd.s32 4294967295, %s1456_s26   ;;  %s1456_s26 = sphi %s1517_s26, %s25_s26   ;;  %s1452_s25 = sphi %s1515_s25, %s1865_s25   ;;  %s1448_s24 = sphi %s1513_s24, %s1864_s24   ;;  %s1444_s23 = sphi %s1511_s23, %s1863_s23   ;;  %s1440_s22 = sphi %s1509_s22, %s1867_s22   ;;  %s1436_s21 = sphi %s1507_s21, %s1866_s21  }
   0xb   : > { %1841 = sst [smem:[#allocation14_spill]] %s1452_s25  ;;  %s1037_s28 = sadd.s32 4294967294, %s1456_s26  }
   0xc   : > { %p59_p0 = scmp.ne.s32.totalorder %s1440_s22, %s1436_s21  ;;  %p1832_p1 = scmp.eq.s32.totalorder %s1538_s27, 0 }
   0xd   : > { %p203_p3 = scmp.eq.s32.totalorder %s1037_s28, 1  ;;  %p1038_p5 = scmp.ge.s32.totalorder %s1456_s26, 1 }
   0xe   : > { %p1547_p4 = por %p1832_p1, %p59_p0  ;;  %p210_p7 = scmp.lt.s32.totalorder %s1456_s26, 3 }
   0xf   : > { %p1552_p6 = por %p203_p3, %p59_p0  ;;  %s1458_s8 = smov [#allocation7]  }
  0x10   : > { %s1842_s29 = scalar_select %p1547_p4, 1, 0 }
  0x11   : > { %s1843_s30 = scalar_select %p1552_p6, 1, 0 }
  0x12   : > { %p1557_p8 = pnand %p1038_p5, %p210_p7  ;;  %s231_s9 = sshll.u32 %s1458_s8, 4  ;;  %s232_s9 = int_to_ptr.vmem [resolvable:$true] %s231_s9 }
  0x13   : > { %s37_s11 = sadd.s32 1, %s1452_s25  ;;  %s1846_s5 = sld [smem:[#allocation17_spill]] }
  0x14   : > { %s1844_s7 = scalar_select %p1557_p8, 1, 0 }
  0x15   : > { %p1165_p9 = pneg %p1557_p8 }
  0x17   : > { %p1566_p11 = pnand %p1165_p9, %p1832_p1 }
  0x19   : > { %s1278_s14 = scalar_lea.hbm %s1846_s5, 4096  ;;  %p1280_p13 = pneg %p1566_p11 }
  0x1a   : > { %p1279_p12 = scmp.ne.s32.totalorder %s1846_s5, %s1278_s14  ;;  %p1285_p5 = scmp.lt.u32.totalorder %s1278_s14, %s1846_s5 }
  0x1c   : > { %p1281_p0 = pnand %p1280_p13, %p1279_p12 }
  0x1e   : > { %p1282_p3 = pneg %p1281_p0 }
  0x20   : > { %p1287_p7 = pnand %p1285_p5, %p1282_p3 }
  0x22   : > { %1290 = shalt.err (!%p1287_p7)
}
  0x23   : > { %s1291_s19 = scalar_lea.vmem %s232_s9, 4096  ;;  %p1299_p2 = scmp.lt.s32.totalorder %s232_s9, %s232_s9 }
  0x24   : > { %p1292_p9 = scmp.ne.s32.totalorder %s232_s9, %s1291_s19  ;;  %p1300_p6 = scmp.lt.s32.totalorder %s1291_s19, %s1291_s19 }
  0x26   : > { %p1294_p10 = pnand %p1292_p9, %p1280_p13  ;;  %p1301_p4 = por %p1300_p6, %p1299_p2 }
  0x28   : > { %p1295_p1 = pneg %p1294_p10 }
  0x2a   : > { %p1302_p8 = pnand %p1301_p4, %p1295_p1 }
  0x2c   : > { %1305 = shalt.err (!%p1302_p8)
}
  0x2d   : > { %s1459_s20 = smov 128   ;;  %s1460_s28 = smov 8  }
  0x2e   : > { %1168 = dma.hbm_to_vmem [thread:$0]  (!%p1566_p11), %s1846_s5, 4096, %s232_s9, [#allocation6], %s1459_s20, %s1459_s20, %s1460_s28  }
  0x2f   : > { %p39_p1 = scmp.ge.s32.totalorder %s37_s11, 2  ;;  %s46_s13 = sadd.s32 1, %s1444_s23 }
  0x30   : > { %p53_p2 = scmp.ne.s32.totalorder %s1444_s23, %s1440_s22  ;;  %p54_p4 = scmp.eq.s32.totalorder %s1456_s26, 0 }
  0x31   : > { %s1869_s11 = smov (%p39_p1, %s37_s11), 0  ;;  %p1849_p8 = scmp.eq.s32.totalorder %s1538_s27, 1 }
  0x32   : > { %1847 = sst [smem:[#allocation15_spill]] %s1869_s11  ;;  %p1593_p6 = por %p54_p4, %p53_p2 }
  0x33   : > { %p1599_p10 = por %p1849_p8, %p53_p2  ;;  %s41_s15 = ssub.s32 %s1452_s25, %s1869_s11 }
  0x34   : > { %p1181_p11 = scmp.lt.s32.totalorder %s1456_s26, 2  ;;  %p44_p12 = scmp.eq.s32.totalorder %s41_s15, 0 }
  0x35   : > { %s1850_s10 = scalar_select %p1599_p10, 1, 0 }
  0x36   : > { %s245_s9 = sand.u32 1, %s1444_s23   ;;  %s1065_s18 = sshll.u32 %s1452_s25, 7 }
  0x37   : > { %s1607_s16 = sshll.u32 %s245_s9, 3  ;;  %s1616_s28 = scalar_lea.hbm %s1825_s0, %s1065_s18 }
  0x38   : > { %s1610_s17 = scalar_select %p44_p12, %s1444_s23, %s46_s13  }
  0x39   : > { %s249_s8 = scalar_lea.vmem [#allocation2], %s1607_s16  ;;  %p1623_p13 = pnand %p1181_p11, %p1593_p6 }
  0x3a   : > { %1851 = sst [smem:[#allocation16_spill]] %s1610_s17  ;;  %s259_s12 = sshll.u32 %s249_s8, 4  ;;  %s1619_s12 = int_to_ptr.vmem [resolvable:$true] %s259_s12 }
  0x3b   : > { %s1630_s19 = scalar_lea.hbm %s1826_s1, %s1065_s18  ;;  %s266_s20 = sand.u32 1, %s1456_s26  }
  0x3c   : > { %s246_s11 = scalar_lea.sflag [#allocation3], %s245_s9  ;;  %s1306_s25 = scalar_lea.hbm %s1616_s28, 128 }
  0x3d   : > { %p1307_p0 = scmp.ne.s32.totalorder %s1616_s28, %s1306_s25  ;;  %p1308_p3 = pneg %p1623_p13 }
  0x3e   : > { %s1311_s17 = scalar_lea.hbm %s1825_s0, 256  ;;  %p1312_p9 = scmp.lt.u32.totalorder %s1616_s28, %s1825_s0 }
  0x3f   : > { %p1309_p5 = pnand %p1308_p3, %p1307_p0  ;;  %p1313_p1 = scmp.lt.u32.totalorder %s1311_s17, %s1306_s25 }
  0x40   : > { %p1315_p4 = scmp.lt.u32.totalorder %s1306_s25, %s1616_s28 }
  0x41   : > { %p1310_p7 = pneg %p1309_p5  ;;  %p1314_p2 = por %p1313_p1, %p1312_p9 }
  0x43   : > { %p1316_p6 = por %p1315_p4, %p1314_p2 }
  0x45   : > { %p1317_p8 = pnand %p1316_p6, %p1310_p7 }
  0x47   : > { %1320 = shalt.err (!%p1317_p8)
}
  0x48   : > { %s1321_s9 = scalar_lea.vmem %s1619_s12, 128  ;;  %s1461_s18 = smov [#allocation2]  }
  0x49   : > { %p1322_p11 = scmp.ne.s32.totalorder %s1619_s12, %s1321_s9  ;;  %s1326_s13 = sshll.u32 %s1461_s18, 4  ;;  %s1327_s13 = int_to_ptr.vmem [resolvable:$false] %s1326_s13 }
  0x4a   : > { %s1328_s23 = scalar_lea.vmem %s1327_s13, 256  ;;  %p1329_p5 = scmp.lt.s32.totalorder %s1619_s12, %s1327_s13 }
  0x4b   : > { %p1324_p12 = pnand %p1322_p11, %p1308_p3  ;;  %p1330_p9 = scmp.lt.s32.totalorder %s1328_s23, %s1321_s9 }
  0x4d   : > { %p1325_p0 = pneg %p1324_p12  ;;  %p1331_p1 = por %p1330_p9, %p1329_p5 }
  0x4f   : > { %p1332_p2 = pnand %p1331_p1, %p1325_p0 }
  0x51   : > { %1335 = shalt.err (!%p1332_p2)
}
  0x52   : > { %1172 = dma.hbm_to_vmem [thread:$0]  (!%p1623_p13), %s1616_s28, 128, %s1619_s12, %s246_s11  }
  0x53   : > { %s270_s25 = scalar_lea.vmem [#allocation5], %s1607_s16  ;;  %s267_s14 = scalar_lea.sflag [#allocation6], %s266_s20 }
  0x54   : > { %s280_s17 = sshll.u32 %s270_s25, 4  ;;  %s1336_s8 = scalar_lea.hbm %s1630_s19, 128  ;;  %s281_s17 = int_to_ptr.vmem [resolvable:$true] %s280_s17 }
  0x55   : > { %p1337_p7 = scmp.ne.s32.totalorder %s1630_s19, %s1336_s8  ;;  %s1341_s18 = scalar_lea.hbm %s1826_s1, 256 }
  0x56   : > { %p1342_p8 = scmp.lt.u32.totalorder %s1630_s19, %s1826_s1  ;;  %p1343_p11 = scmp.lt.u32.totalorder %s1341_s18, %s1336_s8 }
  0x57   : > { %p1339_p4 = pnand %p1337_p7, %p1308_p3  ;;  %p1345_p0 = scmp.lt.u32.totalorder %s1336_s8, %s1630_s19 }
  0x58   : > { %p1344_p12 = por %p1343_p11, %p1342_p8 }
  0x59   : > { %p1340_p6 = pneg %p1339_p4 }
  0x5a   : > { %p1346_p5 = por %p1345_p0, %p1344_p12 }
  0x5c   : > { %p1347_p9 = pnand %p1346_p5, %p1340_p6 }
  0x5e   : > { %1350 = shalt.err (!%p1347_p9)
}
  0x5f   : > { %s1351_s11 = scalar_lea.vmem %s281_s17, 128  ;;  %s1462_s16 = smov [#allocation5]  }
  0x60   : > { %p1352_p1 = scmp.ne.s32.totalorder %s281_s17, %s1351_s11  ;;  %s1356_s28 = sshll.u32 %s1462_s16, 4  ;;  %s1357_s28 = int_to_ptr.vmem [resolvable:$false] %s1356_s28 }
  0x61   : > { %s1358_s12 = scalar_lea.vmem %s1357_s28, 256  ;;  %p1359_p4 = scmp.lt.s32.totalorder %s281_s17, %s1357_s28 }
  0x62   : > { %p1354_p2 = pnand %p1352_p1, %p1308_p3  ;;  %p1360_p10 = scmp.lt.s32.totalorder %s1358_s12, %s1351_s11 }
  0x64   : > { %p1355_p7 = pneg %p1354_p2  ;;  %p1361_p8 = por %p1360_p10, %p1359_p4 }
  0x66   : > { %p1362_p11 = pnand %p1361_p8, %p1355_p7 }
  0x68   : > { %1365 = shalt.err (!%p1362_p11)
}
  0x69   : > { %1175 = dma.hbm_to_vmem [thread:$0]  (!%p1623_p13), %s1630_s19, 128, %s281_s17, %s267_s14  }
  0x6a   : > { %p1853_p6 = scmp.ne.s32.totalorder %s1844_s7, 0 }
  0x6b   : > { %s1683_s20 = sand.u32 (!%p1853_p6), 1, %s1440_s22   ;;  %p1854_p10 = scmp.ne.s32.totalorder (!%p1853_p6), %s1842_s29, 0 }
  0x6c   : > { %289 = sbr.rel (%p1853_p6) target bundleno = 1172 (0x494), region = 44  ;;  %s1686_s25 = sshll.u32 (!%p1853_p6), %s1683_s20, 3 }
  0x6d   : > { %s292_s8 = scalar_lea.sflag (!%p1853_p6), [#allocation3], %s1683_s20  ;;  %s295_s5 = scalar_lea.vmem (!%p1853_p6), [#allocation2], %s1686_s25 }
  0x73   : > { %1419 = dma.done.wait (%p1854_p10), %s292_s8, 128  }
  0x74   : > { %1421 = vsyncadd (%p1854_p10), %s292_s8, 4294967168  ;;  %s300_s7 = sand.u32 1, %s1538_s27   ;;  %s304_s19 = scalar_lea.vmem [#allocation5], %s1686_s25 }
  0x75   : > { %s301_s15 = scalar_lea.sflag [#allocation6], %s300_s7 }
  0x76   : > { %1423 = dma.done.wait (%p1854_p10), %s301_s15, 128  }
  0x77   : > { %1425 = vsyncadd (%p1854_p10), %s301_s15, 4294967168  ;;  %p1855_p13 = scmp.eq.s32.totalorder %s1538_s27, 0 }
  0x79   : > { %1427 = dma.done.wait (%p1855_p13), [#allocation6], 4096   ;;  %p1856_p3 = pmov %p1855_p13 }
  0x7a   : > { %v343_v0 = vld [vmem:[%s295_s5] sm:$0xff]  ;;  %v344_v1 = vld [vmem:[%s304_s19] sm:$0xff]  ;;  %v1463_v4 = vmov 0.0   ;;  %s1464_s17 = smov 1   ;;  %s1465_s14 = smov 127   ;;  %v1466_v8 = vmov 0   ;;  %v561_v39 = vlaneseq }
  0x7b   : > { %1429 = vsyncadd (%p1856_p3), [#allocation6], 4294963200  ;;  %v1243_v2 = vpack.i.bf16 %v343_v0, %v344_v1  ;;  %v346_v3 = vcombine.high %v343_v0, %v343_v0  ;;  %479 = vmatprep.mubr.f32.mxu1 %v1463_v4  ;;  %v348_v6 = vcombine.high %v344_v1, %v344_v1  ;;  %v1709_v7 = vld [vmem:[%s1829_s4] sm:$0xff]  ;;  %1253 = vset.pattern.permute.xlu0 %v1466_v8  ;;  %vm358_vm0 = vcmask 7168   ;;  %s1468_s13 = smov 2   ;;  %s1469_s23 = smov 126  }
  0x7c   : > { %v383_v10 = vrot.slane %v343_v0, 4  ;;  %vm390_vm1 = vcmask 1043456   ;;  %vm375_vm2 = vcmask 1039360   ;;  %v382_v14 = vrot.slane %v344_v1, 4  ;;  %v395_v29 = vld [vmem:[%s1827_s2] sm:$0xff]  ;;  %s1062_s28 = sshll.u32 %s1448_s24, 7 }
  0x7d   : > { %1244 = vrot.lane.b32.xlu0 %v1243_v2, %s1464_s17  ;;  %v1248_v5 = vpack.i.bf16 %v346_v3, %v343_v0  ;;  %vm1467_vm3 = vmmov 1   ;;  %vm402_vm5 = vcmask 97280   ;;  %v562_v40 = vand.u32 127, %v561_v39  ;;  %s341_s12 = scalar_lea.vmem [#allocation8], %s1686_s25  ;;  %s1776_s15 = scalar_lea.hbm %s1831_s6, %s1062_s28 }
  0x7e   : > { %vm1720_vm4 = vmpackc.low %vm390_vm1, %vm1467_vm3  ;;  %v1470_v52 = vmov 1   ;;  %vm610_vm7 = vcmask 15360   ;;  %vm627_vm9 = vcmask 1031168   ;;  %vm642_vm10 = vcmask 195584   ;;  %s919_s8 = sshll.u32 %s341_s12, 4  ;;  %s905_s19 = scalar_lea.sflag [#allocation4], %s1683_s20  ;;  %s1778_s8 = int_to_ptr.vmem [resolvable:$true] %s919_s8 }
  0x7f   : > { %1249 = vrot.lane.b32.xlu1 %v1248_v5, %s1465_s14  ;;  %v563_v41 = vadd.s32 128, %v562_v40  ;;  %v809_v40 = vld [vmem:[#allocation7 + $0x40] sm:$0xff]  ;;  %p1859_p0 = scmp.ne.s32.totalorder %s1850_s10, 0  ;;  %s1471_s24 = smov [#allocation8]  }
  0x80   : > { %1269 = vset.pattern.permute.xlu1 %v1470_v52  ;;  %s1370_s25 = sshll.u32 %s1471_s24, 4  ;;  %s1371_s25 = int_to_ptr.vmem [resolvable:$false] %s1370_s25 }
  0x81   : > { %349 = vrot.lane.b32.xlu0 %v348_v6, %s1464_s17  ;;  %v570_v43 = vadd.s32 4294967168, %v563_v41  ;;  %v810_v41 = vld [vmem:[#allocation7 + $0x48] sm:$0xff]  ;;  %p1373_p1 = scmp.lt.s32.totalorder %s1778_s8, %s1371_s25 }
  0x83   : > { %367 = vrot.lane.b32.xlu1 %v344_v1, %s1465_s14  ;;  %vm578_vm6 = vcmp.lt.s32.totalorder %v570_v43, 16  ;;  %v828_v43 = vld [vmem:[#allocation7 + $0xd8] sm:$0xff] }
  0x84   : > { %vm1115_vm8 = vmpackc.low %vm578_vm6, %vm1467_vm3 }
  0x85   : > { %399 = vperm.xlu0 %1253, %v1709_v7  }
  0x87   : > { %356 = vrot.lane.b32.xlu1 %v346_v3, %s1464_s17  ;;  %s1366_s17 = scalar_lea.vmem %s1778_s8, 128 }
  0x88   : > { %p1367_p12 = scmp.ne.s32.totalorder %s1778_s8, %s1366_s17 }
  0x89   : > { %1275 = vset.pattern.permute.xlu0 %v1470_v52  ;;  %v813_v52 = vld [vmem:[#allocation7 + $0x60] sm:$0xff] }
  0x8a   : > { %p1368_p5 = pnand %p1367_p12, %p1859_p0 }
  0x8b   : > { %373 = vrot.lane.b32.xlu1 %v348_v6, %s1465_s14 }
  0x8c   : > { %p1369_p9 = pneg %p1368_p5 }
  0x8f   : > { %1260 = vrot.lane.b32.xlu1 %v1463_v4, %s1468_s13 }
  0x93   : > { %1265 = vrot.lane.b32.xlu1 %v1463_v4, %s1469_s23 }
  0x97   : > { %639 = vperm.xlu1 %1269, %v1709_v7   ;;  %v637_v7 = vld [vmem:[%s1828_s3] sm:$0xff] }
  0xef   : > { %v1245_v9 = vpop.permute.xlu0 %1244 }
  0xf0   : > { %v1247_v11 = vunpack.i.h.bf16 %v1245_v9  ;;  %v1246_v12 = vunpack.i.l.bf16 %v1245_v9 }
  0xf1   : > { %v1250_v13 = vpop.permute.xlu1 %1249 }
  0xf2   : > { %v1252_v15 = vunpack.i.h.bf16 %v1250_v13  ;;  %v1251_v16 = vunpack.i.l.bf16 %v1250_v13  ;;  %v359_v17 = vsel %vm358_vm0, %v1246_v12, %v1247_v11 }
  0xf3   : > { %v350_v18 = vpop.permute.xlu0 %349  ;;  %v392_v19 = vsel %vm390_vm1, %v359_v17, %v383_v10 }
  0xf4   : > { %v366_v20 = vsel %vm358_vm0, %v350_v18, %v1246_v12  ;;  %v377_v21 = vsel %vm375_vm2, %v1251_v16, %v1252_v15 }
  0xf5   : > { %v391_v23 = vsel %vm390_vm1, %v366_v20, %v382_v14  ;;  %v368_v24 = vpop.permute.xlu1 %367  ;;  %v1102_v25 = vpack.c.bf16 %v377_v21, %v392_v19  ;;  %v817_v14 = vld [vmem:[#allocation7 + $0x80] sm:$0xff]  ;;  %v819_v19 = vld [vmem:[#allocation7 + $0x90] sm:$0xff]  ;;  %v820_v20 = vld [vmem:[#allocation7 + $0x98] sm:$0xff] }
  0xf6   : > { %v376_v26 = vsel %vm375_vm2, %v368_v24, %v1251_v16  ;;  %v801_v16 = vld [vmem:[#allocation7] sm:$0xff]  ;;  %v1127_v22 = vpack.c.bf16 %v820_v20, %v819_v19 }
  0xf7   : > { %v1105_v27 = vpack.c.bf16 %v376_v26, %v391_v23  ;;  %1104 = vmatprep.subr.msk.bf16.mxu1 %vm1720_vm4, %v1102_v25  ;;  %v803_v23 = vld [vmem:[#allocation7 + $0x10] sm:$0xff]  ;;  %v821_v25 = vld [vmem:[#allocation7 + $0xa0] sm:$0xff]  ;;  %v822_v26 = vld [vmem:[#allocation7 + $0xa8] sm:$0xff] }
  0xf9   : > { %v357_v28 = vpop.permute.xlu1 %356  ;;  %1107 = vmatpush1.bf16.msk.msra.mxu1 %vm1720_vm4, %v1105_v27  ;;  %v1131_v27 = vpack.c.bf16 %v822_v26, %v821_v25 }
  0xfa   : > { %v360_v30 = vsel %vm358_vm0, %v1247_v11, %v357_v28  ;;  %v361_v31 = vsel %vm358_vm0, %v357_v28, %v350_v18  ;;  %v802_v18 = vld [vmem:[#allocation7 + $0x8] sm:$0xff]  ;;  %v805_v28 = vld [vmem:[#allocation7 + $0x20] sm:$0xff] }
  0xfb   : > { %v393_v33 = vsel %vm390_vm1, %v360_v30, %v346_v3  ;;  %v394_v34 = vsel %vm390_vm1, %v361_v31, %v348_v6  ;;  %v1125_v21 = vpack.c.bf16 %v802_v18, %v801_v16  ;;  %v823_v30 = vld [vmem:[#allocation7 + $0xb0] sm:$0xff]  ;;  %v824_v31 = vld [vmem:[#allocation7 + $0xb8] sm:$0xff] }
  0xfc   : > { %1054 = vmatmul.mubr.msk.f32.vlgmr.msra.gmra.mrb[0].mxu1 %vm402_vm5, %v395_v29 }
  0xfd   : > { %v374_v32 = vpop.permute.xlu1 %373  ;;  %550 = vmatprep.mubr.f32.mxu1 %v1463_v4 }
  0xfe   : > { %v378_v35 = vsel %vm375_vm2, %v1252_v15, %v374_v32  ;;  %v381_v36 = vsel %vm375_vm2, %v374_v32, %v368_v24  ;;  %v818_v15 = vld [vmem:[#allocation7 + $0x88] sm:$0xff]  ;;  %v804_v24 = vld [vmem:[#allocation7 + $0x18] sm:$0xff] }
  0xff   : > { %v1108_v37 = vpack.c.bf16 %v381_v36, %v394_v34  ;;  %v1111_v38 = vpack.c.bf16 %v378_v35, %v393_v33  ;;  %v1123_v17 = vpack.c.bf16 %v818_v15, %v817_v14  ;;  %v1135_v33 = vpack.c.bf16 %v824_v31, %v823_v30  ;;  %v807_v34 = vld [vmem:[#allocation7 + $0x30] sm:$0xff]  ;;  %v808_v35 = vld [vmem:[#allocation7 + $0x38] sm:$0xff]  ;;  %v825_v36 = vld [vmem:[#allocation7 + $0xc0] sm:$0xff] }
 0x101   : > { %1110 = vmatprep.subr.msk.bf16.mxu1 %vm1720_vm4, %v1108_v37  ;;  %v1261_v53 = vpop.permute.xlu1 %1260  ;;  %1124 = vmatprep.subr.bf16.mxu0 %v1123_v17  ;;  %v826_v37 = vld [vmem:[#allocation7 + $0xc8] sm:$0xff] }
 0x102   : > { %1113 = vmatpush1.bf16.msk.msra.mxu1 %vm1720_vm4, %v1111_v38  ;;  %v1262_v54 = vunpack.i.l.bf16 %v1261_v53  ;;  %v1263_v59 = vunpack.i.h.bf16 %v1261_v53  ;;  %1126 = vmatpush3.bf16.msra.mxu0 %v1125_v21  ;;  %v1137_v38 = vpack.c.bf16 %v808_v35, %v807_v34  ;;  %v1139_v39 = vpack.c.bf16 %v826_v37, %v825_v36  ;;  %v814_v53 = vld [vmem:[#allocation7 + $0x68] sm:$0xff] }
 0x103   : > { %1128 = vmatprep.subr.bf16.mxu0 %v1127_v22 }
 0x104   : > { %v400_v42 = vpop.permute.xlu0 %399  ;;  %v613_v5 = vsel %vm610_vm7, %v1263_v59, %v1262_v54 }
 0x105   : > { %1057 = vmatmul.mubr.msk.f32.vlgmr.msra.gmra.mrb[2].mxu1 %vm402_vm5, %v395_v29  ;;  %v1266_v56 = vpop.permute.xlu1 %1265  ;;  %v1119_v10 = vpack.c.bf16 %v1463_v4, %v613_v5  ;;  %v806_v29 = vld [vmem:[#allocation7 + $0x28] sm:$0xff] }
 0x106   : > { %710 = vmatprep.mubr.f32.mxu1 %v1463_v4  ;;  %v1267_v62 = vunpack.i.l.bf16 %v1266_v56  ;;  %v1268_v2 = vunpack.i.h.bf16 %v1266_v56  ;;  %v1133_v32 = vpack.c.bf16 %v806_v29, %v805_v28  ;;  %v832_v56 = vld [vmem:[#allocation7 + $0xf8] sm:$0xff] }
 0x1cf   : > { %v481_v44 = vpop.f32.mrb[0].mxu1 }
 0x1d0   : > { %v483_v45 = vpop.f32.mrb[1].mxu1  ;;  %v1141_v44 = vpack.c.bf16 %v810_v41, %v809_v40 }
 0x1d1   : > { %v484_v46 = vadd.f32 %v483_v45, %v400_v42  ;;  %v827_v42 = vld [vmem:[#allocation7 + $0xd0] sm:$0xff] }
 0x1d2   : > { %v1143_v45 = vpack.c.bf16 %v828_v43, %v827_v42 }
 0x1d3   : > { %v558_v47 = vmax.f32 %v484_v46, 0.0  ;;  %v811_v46 = vld [vmem:[#allocation7 + $0x50] sm:$0xff] }
 0x1d5   : > { %v594_v48 = vsel %vm578_vm6, %v558_v47, 0.0 }
 0x1d6   : > { %v1254_v49 = vpack.i.bf16 %v594_v48, %v1463_v4 }
 0x1d8   : > { %1255 = vrot.lane.b32.xlu0 %v1254_v49, %s1468_s13  ;;  %v552_v50 = vpop.f32.mrb[2].mxu1  ;;  %v830_v49 = vld [vmem:[#allocation7 + $0xe8] sm:$0xff] }
 0x1d9   : > { %v554_v51 = vpop.f32.mrb[3].mxu1 }
 0x1dc   : > { %621 = vrot.lane.b32.xlu0 %v594_v48, %s1469_s23  ;;  %v829_v48 = vld [vmem:[#allocation7 + $0xe0] sm:$0xff] }
 0x1dd   : > { %v1147_v51 = vpack.c.bf16 %v830_v49, %v829_v48 }
 0x1e0   : > { %625 = vrot.lane.b32.xlu0 %v1463_v4, %s1469_s23 }
 0x24a   : > { %v1256_v55 = vpop.permute.xlu0 %1255 }
 0x24b   : > { %v1258_v57 = vunpack.i.h.bf16 %v1256_v55  ;;  %v1257_v58 = vunpack.i.l.bf16 %v1256_v55  ;;  %v831_v55 = vld [vmem:[#allocation7 + $0xf0] sm:$0xff] }
 0x24d   : > { %v611_v60 = vsel %vm610_vm7, %v1257_v58, %v1258_v57  ;;  %v618_v61 = vsel %vm610_vm7, %v1262_v54, %v1257_v58  ;;  %v612_v6 = vsel %vm610_vm7, %v1258_v57, %v1263_v59  ;;  %v1149_v54 = vpack.c.bf16 %v814_v53, %v813_v52  ;;  %v815_v59 = vld [vmem:[#allocation7 + $0x70] sm:$0xff] }
 0x24e   : > { %v1114_v63 = vpack.c.bf16 %v558_v47, %v611_v60  ;;  %v1117_v0 = vpack.c.bf16 %v1463_v4, %v618_v61  ;;  %v622_v1 = vpop.permute.xlu0 %621  ;;  %v1121_v11 = vpack.c.bf16 %v1463_v4, %v612_v6  ;;  %v812_v47 = vld [vmem:[#allocation7 + $0x58] sm:$0xff]  ;;  %v1151_v58 = vpack.c.bf16 %v832_v56, %v831_v55 }
 0x24f   : > { %v629_v3 = vsel %vm627_vm9, %v622_v1, %v1267_v62  ;;  %v628_v8 = vsel %vm627_vm9, %v1268_v2, %v622_v1  ;;  %v1145_v50 = vpack.c.bf16 %v812_v47, %v811_v46  ;;  %v816_v60 = vld [vmem:[#allocation7 + $0x78] sm:$0xff] }
 0x250   : > { %1116 = vmatprep.subr.msk.bf16.mxu1 %vm1115_vm8, %v1114_v63  ;;  %v640_v63 = vpop.permute.xlu1 %639 }
 0x251   : > { %1118 = vmatpush1.bf16.msra.mxu1 %v1117_v0 }
 0x252   : > { %650 = vmatprep.subr.mxu1 %v629_v3  ;;  %v626_v9 = vpop.permute.xlu0 %625 }
 0x253   : > { %v636_v12 = vsel %vm627_vm9, %v626_v9, %v1268_v2  ;;  %v630_v13 = vsel %vm627_vm9, %v1267_v62, %v626_v9  ;;  %v1153_v62 = vpack.c.bf16 %v816_v60, %v815_v59 }
 0x255   : > { %651 = vmatpush1.msra.mxu1 %v628_v8 }
 0x256   : > { %1059 = vmatmul.mubr.msk.f32.vlgmr.msra.gmra.mrb[4].mxu1 %vm642_vm10, %v637_v7  ;;  %1120 = vmatprep.subr.bf16.mxu1 %v1119_v10 }
 0x257   : > { %1122 = vmatpush1.bf16.msra.mxu1 %v1121_v11  ;;  %780 = vmatprep.mubr.f32.mxu1 %v1463_v4  ;;  %v1129_v4 = vpack.c.bf16 %v804_v24, %v803_v23 }
 0x258   : > { %720 = vmatprep.subr.mxu1 %v636_v12 }
 0x259   : > { %1130 = vmatpush3.bf16.msra.mxu0 %v1129_v4 }
 0x25a   : > { %1132 = vmatprep.subr.bf16.mxu0 %v1131_v27 }
 0x25b   : > { %721 = vmatpush1.msra.mxu1 %v630_v13 }
 0x25c   : > { %1060 = vmatmul.mubr.msk.f32.vlgmr.msra.gmra.mrb[6].mxu1 %vm642_vm10, %v637_v7 }
 0x25d   : > { %1134 = vmatpush3.bf16.msra.mxu0 %v1133_v32 }
 0x25e   : > { %1136 = vmatprep.subr.bf16.mxu0 %v1135_v33 }
 0x261   : > { %1138 = vmatpush3.bf16.msra.mxu0 %v1137_v38 }
 0x262   : > { %1140 = vmatprep.subr.bf16.mxu0 %v1139_v39 }
 0x265   : > { %1142 = vmatpush3.bf16.msra.mxu0 %v1141_v44 }
 0x266   : > { %1144 = vmatprep.subr.bf16.mxu0 %v1143_v45 }
 0x269   : > { %1146 = vmatpush3.bf16.msra.mxu0 %v1145_v50 }
 0x26a   : > { %1148 = vmatprep.subr.bf16.mxu0 %v1147_v51 }
 0x26d   : > { %1150 = vmatpush3.bf16.msra.mxu0 %v1149_v54 }
 0x26e   : > { %1152 = vmatprep.subr.bf16.mxu0 %v1151_v58 }
 0x271   : > { %1154 = vmatpush3.bf16.msra.mxu0 %v1153_v62 }
 0x329   : > { %v712_v57 = vpop.f32.mrb[4].mxu1 }
 0x32a   : > { %v713_v61 = vpop.f32.mrb[5].mxu1 }
 0x32b   : > { %v714_v0 = vadd.f32 %v713_v61, %v640_v63 }
 0x32d   : > { %v786_v5 = vmax.f32 %v714_v0, 0.0 }
 0x32f   : > { %v782_v1 = vpop.f32.mrb[6].mxu1 }
 0x330   : > { %v783_v2 = vadd.f32 %v782_v1, %v640_v63  ;;  %v784_v3 = vpop.f32.mrb[7].mxu1 }
 0x332   : > { %v787_v6 = vmax.f32 %v783_v2, 0.0 }
 0x334   : > { %v1270_v7 = vpack.i.bf16 %v787_v6, %v786_v5 }
 0x336   : > { %1271 = vrot.lane.b32.xlu0 %v1270_v7, %s1465_s14  ;;  %s1372_s14 = scalar_lea.vmem %s1371_s25, 256 }
 0x337   : > { %p1374_p2 = scmp.lt.s32.totalorder %s1372_s14, %s1366_s17 }
 0x339   : > { %p1375_p7 = por %p1374_p2, %p1373_p1 }
 0x33b   : > { %p1376_p4 = pnand %p1375_p7, %p1369_p9 }
 0x3a8   : > { %v1272_v8 = vpop.permute.xlu0 %1271 }
 0x3a9   : > { %v1274_v9 = vunpack.i.h.bf16 %v1272_v8  ;;  %v1273_v10 = vunpack.i.l.bf16 %v1272_v8 }
 0x3ab   : > { %v798_v11 = vsel %vm375_vm2, %v1274_v9, %v1273_v10  ;;  %v794_v12 = vsel %vm375_vm2, %v1273_v10, %v1274_v9 }
 0x3ac   : > { %v800_v13 = vmax.f32 %v787_v6, %v798_v11  ;;  %v799_v14 = vmax.f32 %v786_v5, %v794_v12 }
 0x3ae   : > { %897 = vmatprep.mubr.f32.mxu0 %v800_v13 }
 0x3af   : > { %898 = vmatmul.mubr.f32.vlgmr.msra.gmra.mrb[0].mxu0 %v799_v14 }
 0x482   : > { %v1099_v15 = vpop.f32.mrb[0].mxu0 }
 0x483   : > { %v1100_v16 = vpop.f32.mrb[1].mxu0 }
 0x484   : > { %v1101_v17 = vadd.f32 %v1100_v16, %v1099_v15 }
 0x486   : > { %903 = vst [vmem:[%s341_s12] sm:$0xff] %v1101_v17 }
 0x487   : > { %1379 = shalt.err (!%p1376_p4)
}
 0x488   : > { %s1380_s20 = scalar_lea.hbm %s1776_s15, 128  ;;  %s1384_s27 = scalar_lea.hbm %s1831_s6, 256 }
 0x489   : > { %p1381_p8 = scmp.ne.s32.totalorder %s1776_s15, %s1380_s20  ;;  %p1385_p10 = scmp.lt.u32.totalorder %s1776_s15, %s1831_s6 }
 0x48a   : > { %p1386_p13 = scmp.lt.u32.totalorder %s1384_s27, %s1380_s20  ;;  %p1388_p12 = scmp.lt.u32.totalorder %s1380_s20, %s1776_s15 }
 0x48b   : > { %p1382_p11 = pnand %p1381_p8, %p1859_p0 }
 0x48c   : > { %p1387_p3 = por %p1386_p13, %p1385_p10 }
 0x48d   : > { %p1383_p6 = pneg %p1382_p11 }
 0x48e   : > { %p1389_p5 = por %p1388_p12, %p1387_p3 }
 0x490   : > { %p1390_p9 = pnand %p1389_p5, %p1383_p6 }
 0x492   : > { %1393 = shalt.err (!%p1390_p9)
}
 0x493   : > { %1163 = dma.vmem_to_hbm [thread:$0]  (%p1859_p0), %s1778_s8, 128, %s1776_s15, %s905_s19  }
 0x494 PF: > { %s931_s23 = sand.u32 1, %s1436_s21   ;;  %p1860_p1 = scmp.ne.s32.totalorder %s1843_s30, 0 }
 0x495   : > { %p1861_p2 = scmp.ge.s32.totalorder %s1456_s26, 2  ;;  %s932_s11 = scalar_lea.sflag [#allocation4], %s931_s23 }
 0x497   : > { %p1177_p7 = pnand %p1861_p2, %p1860_p1 }
 0x499   : > { %1431 = dma.done.wait (!%p1177_p7), %s932_s11, 128  }
 0x49a   : > { %1433 = vsyncadd (!%p1177_p7), %s932_s11, 4294967168  ;;  %s25_s26 = sadd.s32 1, %s1456_s26   ;;  %s1862_s16 = sld [smem:[#allocation13_spill]] }
 0x49b   : > { %p22_p4 = scmp.ge.s32.totalorder %s25_s26, 4   ;;  %s1863_s23 = sld [smem:[#allocation16_spill]] }
 0x49c   : > { %s1864_s24 = sld [smem:[#allocation14_spill]]  ;;  %s1865_s25 = sld [smem:[#allocation15_spill]] }
 0x49d   : > { %s1866_s21 = smov %s1440_s22  ;;  %24 = sbr.rel (!%p22_p4) target bundleno = 10 (0xa), region = 106 }
 0x4a0   : > { %s1867_s22 = smov %s1862_s16 }
 0x4a4   :  { %937 = vsyncpa [#allocation3], 1 }
 0x4a5   :  { %939 = vsyncpa [#allocation3 + $0x1], 1 }
 0x4a6   :  { %940 = vsyncpa [#allocation6], 1 }
 0x4a7   :  { %942 = vsyncpa [#allocation6 + $0x1], 1 }
 0x4a8   :  { %943 = vsyncpa [#allocation4], 1 }
 0x4a9   :  { %945 = vsyncpa [#allocation4 + $0x1], 1 }

</bundles_post_ra>
